<compile_context>
chip_gen: v7x
topology: tpu7x:2x2x1
jax: 0.10.0
libtpu: 0.0.40
codegen_flags: <defaults>
</compile_context>

<pallas_src>
import math

import jax
import jax.numpy as jnp
from jax.experimental import pallas as pl
from jax.experimental.pallas import tpu as pltpu


def _linear_kernel_o1(x_ref, w_ref, b_ref, o_ref):
    # x_ref: (TB, D) VMEM   w_ref: (1, D) VMEM   b_ref: (1,) SMEM   o_ref: (1, TB) VMEM
    # Contraction on the last axis of both operands (A @ B^T): the weight is the
    # stationary operand, nothing gets transposed/relayouted, and the (1, TB)
    # result is lane-dense (batch on lanes) so stores are unmasked full-lane vst.
    y = jax.lax.dot_general(
        w_ref[...], x_ref[...],
        dimension_numbers=(((1,), (1,)), ((), ())),
        preferred_element_type=jnp.float32,
    )  # (1, TB), f32 accumulation on the MXU
    o_ref[...] = (y + b_ref[0]).astype(o_ref.dtype)


def _linear_kernel_general(x_ref, w_ref, b_ref, o_ref):
    # General output_dim path.  x_ref: (TB, D)  w_ref: (O, D)  b_ref: (O, 1)  o_ref: (O, TB)
    y = jax.lax.dot_general(
        w_ref[...], x_ref[...],
        dimension_numbers=(((1,), (1,)), ((), ())),
        preferred_element_type=jnp.float32,
    )  # (O, TB)
    o_ref[...] = (y + b_ref[...]).astype(o_ref.dtype)


def linear_regression_forward(x, weight, bias, *, block_rows=512):
    """y = x @ weight.T + bias   (exact nn.Linear forward semantics)."""
    B, D = x.shape
    O, D2 = weight.shape
    assert D == D2 and bias.shape == (O,)
    itemsize = jnp.dtype(x.dtype).itemsize

    # Batch tile must be a multiple of 128 (it is the lane axis of the output
    # block).  For B < 128 pad the (tiny) batch up to a single full tile;
    # otherwise no padding: the tail is handled as a Pallas partial block.
    if B < 128:
        x = jnp.pad(x, ((0, 128 - B), (0, 0)))
        B_run = 128
    else:
        B_run = B

    # Cap TB so 2x double-buffered x tiles stay <= ~24 MiB (safe on v7x VMEM).
    vmem_cap_rows = max(128, ((24 * 2**20) // (2 * D * itemsize)) // 128 * 128)
    TB = max(128, min(block_rows, (B_run // 128) * 128, vmem_cap_rows) // 128 * 128)

    grid = (pl.cdiv(B_run, TB),)  # non-divisible tail -> masked partial block

    if O == 1:
        kernel = _linear_kernel_o1
        bias_arg = bias.reshape(1)
        bias_spec = pl.BlockSpec(memory_space=pltpu.MemorySpace.SMEM)
    else:
        kernel = _linear_kernel_general
        bias_arg = bias.reshape(O, 1)
        bias_spec = pl.BlockSpec((O, 1), lambda i: (0, 0))

    # 2x double-buffered x tile + 2x output tile + resident W + slack.
    tile_bytes = itemsize * (2 * TB * D + 2 * O * TB + O * D) + 256 * 1024
    vmem_limit = int(min(64 * 2**20, max(16 * 2**20, 2 * tile_bytes)))

    out = pl.pallas_call(
        kernel,
        out_shape=jax.ShapeDtypeStruct((O, B_run), x.dtype),
        grid=grid,
        in_specs=[
            pl.BlockSpec((TB, D), lambda i: (i, 0)),   # x: streamed per batch tile
            pl.BlockSpec((O, D), lambda i: (0, 0)),    # W: resident across the grid
            bias_spec,                                  # b: SMEM scalar (O=1) / tiny VMEM col
        ],
        out_specs=pl.BlockSpec((O, TB), lambda i: (0, i)),  # lane-dense output slab
        compiler_params=pltpu.CompilerParams(
            dimension_semantics=("parallel",),
            vmem_limit_bytes=vmem_limit,
        ),
    )(x, weight, bias_arg)

    return out[:, :B].T  # (B, O); trims any padded / masked tail columns


def init_params(key, input_dim, output_dim=1, dtype=jnp.float32):
    """Xavier-uniform weight (matches torch.nn.init.xavier_uniform_) and torch's
    default nn.Linear bias init U(-1/sqrt(fan_in), 1/sqrt(fan_in))."""
    wkey, bkey = jax.random.split(key)
    limit = math.sqrt(6.0 / (input_dim + output_dim))
    weight = jax.random.uniform(
        wkey, (output_dim, input_dim), dtype=dtype, minval=-limit, maxval=limit
    )
    b_limit = 1.0 / math.sqrt(input_dim)
    bias = jax.random.uniform(
        bkey, (output_dim,), dtype=dtype, minval=-b_limit, maxval=b_limit
    )
    return weight, bias


if __name__ == "__main__":
    key = jax.random.PRNGKey(0)
    xkey, pkey = jax.random.split(key)

    batch = 1000        # not a multiple of the 512-row tile: exercises the
                        # partial tail block (2-step batch grid, no x pad copy)
    input_dim = 128
    output_dim = 1

    x = jax.random.normal(xkey, (batch, input_dim), dtype=jnp.float32)
    weight, bias = init_params(pkey, input_dim, output_dim)

    y = linear_regression_forward(x, weight, bias)
    jax.block_until_ready(y)

    # Reference check against plain JAX.
    y_ref = x @ weight.T + bias[None, :]
    assert y.shape == (batch, output_dim)
    assert jnp.allclose(y, y_ref, atol=1e-4, rtol=1e-4)

    print("KERNEL_OK")
</pallas_src>

<mosaic_0001>
module attributes {stable_mosaic.version = 11 : i64} {
  func.func @_linear_kernel_o1(%arg0: i32, %arg1: memref<512x128xf32, #tpu.memory_space<vmem>>, %arg2: memref<1x128xf32, #tpu.memory_space<vmem>>, %arg3: memref<1xf32, #tpu.memory_space<smem>>, %arg4: memref<1x512xf32, #tpu.memory_space<vmem>>) attributes {dimension_semantics = [#tpu.dimension_semantics<parallel>], iteration_bounds = array<i64: 2>, scalar_prefetch = 0 : i64, scratch_operands = 0 : i64, tpu.core_type = #tpu.core_type<tc>, window_params = [{transform_indices = @transform_0, window_bounds = array<i64: 512, 128>}, {pipeline_mode = #tpu.pipeline_mode<synchronous>, transform_indices = @transform_1, window_bounds = array<i64: 1, 128>}, {transform_indices = @transform_2, window_bounds = array<i64: 1>}, {transform_indices = @transform_3, window_bounds = array<i64: 1, 512>}]} {
    %c0 = arith.constant 0 : index
    %c0_0 = arith.constant 0 : index
    %0 = vector.load %arg2[%c0, %c0_0] : memref<1x128xf32, #tpu.memory_space<vmem>>, vector<1x128xf32>
    %c0_1 = arith.constant 0 : index
    %c0_2 = arith.constant 0 : index
    %1 = vector.load %arg1[%c0_1, %c0_2] : memref<512x128xf32, #tpu.memory_space<vmem>>, vector<512x128xf32>
    %cst = arith.constant dense<0.000000e+00> : vector<1x512xf32>
    %2 = tpu.matmul %0, %1, %cst {dimension_numbers = #tpu.dot_dimension_numbers<[1], [1], [0], [0], [0, 0, 1, 0], [], []>} : vector<1x128xf32>, vector<512x128xf32>, vector<1x512xf32> -> vector<1x512xf32>
    %c0_3 = arith.constant 0 : index
    %3 = memref.load %arg3[%c0_3] : memref<1xf32, #tpu.memory_space<smem>>
    %4 = vector.broadcast %3 : f32 to vector<1x512xf32>
    %5 = arith.addf %2, %4 : vector<1x512xf32>
    %c0_4 = arith.constant 0 : index
    %c0_5 = arith.constant 0 : index
    %6 = vector.load %arg4[%c0_4, %c0_5] : memref<1x512xf32, #tpu.memory_space<vmem>>, vector<1x512xf32>
    tpu.vector_store %arg4[%c0_4, %c0_5], %5 {strides = array<i32>} : memref<1x512xf32, #tpu.memory_space<vmem>>, vector<1x512xf32>,
    return
  }
  func.func @transform_0(%arg0: i32) -> (i32, i32) {
    %c0_i32 = arith.constant 0 : i32
    %c0_i32_0 = arith.constant 0 : i32
    return %arg0, %c0_i32 : i32, i32
  }
  func.func @transform_1(%arg0: i32) -> (i32, i32) {
    %c0_i32 = arith.constant 0 : i32
    %c0_i32_0 = arith.constant 0 : i32
    %c0_i32_1 = arith.constant 0 : i32
    return %c0_i32, %c0_i32_0 : i32, i32
  }
  func.func @transform_2(%arg0: i32) -> i32 {
    %c0_i32 = arith.constant 0 : i32
    %c0_i32_0 = arith.constant 0 : i32
    return %c0_i32 : i32
  }
  func.func @transform_3(%arg0: i32) -> (i32, i32) {
    %c0_i32 = arith.constant 0 : i32
    %c0_i32_0 = arith.constant 0 : i32
    return %c0_i32, %arg0 : i32, i32
  }
}

</mosaic_0001>

<bundles_post_ra>
// kernel: tpu_custom_call.1
= control target key start
LH: loop header
LB: loop body
LE: loop exit
PB: predicated region body
PF: predicated region fallthrough
CT: control target
= control target key end

     0   :  { %s1081_s0 = inlined_call_operand.hbm [shape: f32[1000,128], index: 0, kind: input, shape index: {}]   ;;  %s1082_s1 = inlined_call_operand.vmem [shape: f32[1,128], index: 1, kind: input, shape index: {}]   ;;  %s1083_s2 = inlined_call_operand.<no memory space> [shape: f32[1], index: 2, kind: input, shape index: {}]   ;;  %s1084_s3 = inlined_call_operand.hbm [shape: f32[1,1000], index: 3, kind: output, shape index: {}]  }
   0x1   :  { %8 = sst [smem:[#allocation2]] %s1083_s2 }
   0x2   :  { %9 = vsyncpa [#allocation4], 0 }
   0x3   :  { %11 = vsyncpa [#allocation4 + $0x1], 0 }
   0x4   :  { %12 = vsyncpa [#allocation5], 0 }
   0x5   :  { %14 = vsyncpa [#allocation5 + $0x1], 0  ;;  %s849_s14 = smov 0   ;;  %s851_s15 = smov 0  }
   0x6   :  { %s853_s16 = smov 0   ;;  %s855_s17 = smov 0  }
   0x7 LB: > { %s870_s2 = sadd.s32 4294967295, %s819_s17   ;;  %s530_s18 = sadd.s32 4294967294, %s819_s17   ;;  %s819_s17 = sphi %s855_s17, %s1094_s17   ;;  %s815_s16 = sphi %s853_s16, %s1093_s16   ;;  %s811_s15 = sphi %s851_s15, %s1092_s15   ;;  %s807_s14 = sphi %s849_s14, %s1091_s14  }
   0x8   : > { %s874_s19 = sadd.s32 1, %s819_s17   ;;  %s27_s20 = sadd.s32 1, %s815_s16 }
   0x9   : > { %s24_s21 = ssub.s32 %s819_s17, %s874_s19  ;;  %p34_p0 = scmp.ne.s32.totalorder %s815_s16, %s811_s15 }
   0xa   : > { %p25_p1 = scmp.eq.s32.totalorder %s24_s21, 0  ;;  %p35_p2 = scmp.eq.s32.totalorder %s819_s17, 0 }
   0xb   : > { %p40_p3 = scmp.ne.s32.totalorder %s811_s15, %s807_s14  ;;  %p41_p4 = scmp.eq.s32.totalorder %s870_s2, 0 }
   0xc   : > { %s886_s22 = scalar_select %p25_p1, %s815_s16, %s27_s20  }
   0xd   : > { %p36_p5 = por %p35_p2, %p34_p0  ;;  %p888_p6 = por %p41_p4, %p40_p3 }
   0xe   : > { %p106_p7 = scmp.eq.s32.totalorder %s870_s2, 1  ;;  %p112_p8 = scmp.eq.s32.totalorder %s530_s18, 1 }
   0xf   : > { %p1085_p11 = scmp.ge.s32.totalorder %s819_s17, 2 }
  0x10   : > { %p893_p9 = por %p106_p7, %p34_p0  ;;  %p897_p10 = por %p112_p8, %p40_p3 }
  0x11   : > { %134 = sbr.rel (%p1085_p11) target bundleno = 59 (0x3b), region = 24 }
  0x12   : > { %s1088_s25 = scalar_select %p897_p10, 1, 0 }
  0x18   : > { %137 = sbr.rel (!%p36_p5) target bundleno = 59 (0x3b), region = 28  ;;  %s138_s26 = sand.u32 (%p36_p5), 1, %s815_s16  }
  0x19   : > { %s534_s27 = sshll.u32 (%p36_p5), %s819_s17, 6  ;;  %s533_s28 = sshll.u32 (%p36_p5), %s138_s26, 9 }
  0x1a   : > { %s144_s29 = ssub.s32 (%p36_p5), 125, %s534_s27  ;;  %s909_s5 = scalar_lea.sflag (%p36_p5), [#allocation4], %s138_s26 }
  0x1b   : > { %p145_p12 = scmp.lt.s32.totalorder (%p36_p5), %s144_s29, 64  ;;  %s142_s6 = scalar_lea.vmem (%p36_p5), [#allocation3], %s533_s28 }
  0x1f   : > { %s1096_s29 = smov (!%p145_p12, %s144_s29), 64 }
  0x20   : > { %s906_s30 = sshll.u32 %s1096_s29, 7 }
  0x21   : > { %s149_s4 = ssub.s32 8192, %s906_s30 }
  0x22   : > { %150 = vsyncadd %s909_s5, %s149_s4  ;;  %p536_p13 = scmp.ne.s32.totalorder %s906_s30, 0  ;;  %s548_s7 = sshll.u32 %s819_s17, 13 }
  0x23   : > { %s917_s10 = scalar_lea.hbm %s1081_s0, %s548_s7  ;;  %s155_s11 = sshll.u32 %s142_s6, 4  ;;  %s919_s11 = int_to_ptr.vmem [resolvable:$true] %s155_s11 }
  0x24   : > { %s725_s12 = scalar_lea.hbm %s917_s10, %s906_s30  ;;  %s729_s20 = scalar_lea.hbm %s1081_s0, 16000 }
  0x25   : > { %p726_p0 = scmp.ne.s32.totalorder %s917_s10, %s725_s12  ;;  %p730_p3 = scmp.lt.u32.totalorder %s917_s10, %s1081_s0 }
  0x26   : > { %p731_p4 = scmp.lt.u32.totalorder %s729_s20, %s725_s12  ;;  %p733_p7 = scmp.lt.u32.totalorder %s725_s12, %s917_s10 }
  0x27   : > { %p727_p1 = pnand %p726_p0, %p536_p13 }
  0x28   : > { %p732_p5 = por %p731_p4, %p730_p3 }
  0x29   : > { %p728_p2 = pneg %p727_p1 }
  0x2a   : > { %p734_p8 = por %p733_p7, %p732_p5 }
  0x2c   : > { %p735_p12 = pnand %p734_p8, %p728_p2 }
  0x2e   : > { %738 = shalt.err (!%p735_p12)
}
  0x2f   : > { %s739_s27 = scalar_lea.vmem %s919_s11, %s906_s30  ;;  %s821_s28 = smov [#allocation3]  }
  0x30   : > { %p740_p0 = scmp.ne.s32.totalorder %s919_s11, %s739_s27  ;;  %s743_s29 = sshll.u32 %s821_s28, 4  ;;  %s744_s29 = int_to_ptr.vmem [resolvable:$false] %s743_s29 }
  0x31   : > { %s745_s4 = scalar_lea.vmem %s744_s29, 16384  ;;  %p746_p10 = scmp.lt.s32.totalorder %s919_s11, %s744_s29 }
  0x32   : > { %p741_p1 = pnand %p740_p0, %p536_p13  ;;  %p747_p3 = scmp.lt.s32.totalorder %s745_s4, %s739_s27 }
  0x34   : > { %p742_p11 = pneg %p741_p1  ;;  %p748_p4 = por %p747_p3, %p746_p10 }
  0x36   : > { %p749_p5 = pnand %p748_p4, %p742_p11 }
  0x38   : > { %752 = shalt.err (!%p749_p5)
}
  0x39   : > { %s822_s6 = smov 128   ;;  %s823_s7 = smov 8  }
  0x3a   : > { %161 = dma.hbm_to_vmem [thread:$0]  (%p536_p13), %s917_s10, %s906_s30, %s919_s11, %s909_s5, %s822_s6, %s822_s6, %s823_s7  }
  0x3b PF: > { %p540_p2 = scmp.ge.s32.totalorder %s819_s17, 1  ;;  %p163_p7 = scmp.lt.s32.totalorder %s819_s17, 3 }
  0x3d   : > { %p164_p8 = pnand %p540_p2, %p163_p7 }
  0x3e   : > { %s949_s8 = sand.u32 (!%p164_p8), 1, %s811_s15  }
  0x3f   : > { %167 = sbr.rel (%p164_p8) target bundleno = 377 (0x179), region = 32  ;;  %s541_s9 = sshll.u32 (!%p164_p8), %s949_s8, 9 }
  0x40   : > { %s170_s12 = scalar_lea.sflag (!%p164_p8), [#allocation4], %s949_s8  ;;  %s953_s13 = scalar_lea.vmem (!%p164_p8), [#allocation3], %s541_s9 }
  0x46   : > { %798 = dma.done.wait (%p888_p6), %s170_s12, 8192  }
  0x47   : > { %800 = vsyncadd (%p888_p6), %s170_s12, 4294959104  ;;  %v219_v0 = vld [vmem:[%s953_s13 + $0x80] sm:$0xff]  ;;  %v220_v1 = vld [vmem:[%s953_s13 + $0x88] sm:$0xff]  ;;  %s267_s5 = sld [smem:[#allocation2]]  ;;  %s542_s10 = sshll.u32 %s949_s8, 2 }
  0x48   : > { %v251_v2 = vld [vmem:[%s953_s13 + $0x180] sm:$0xff]  ;;  %v618_v3 = vpack.c.bf16 %v220_v1, %v219_v0  ;;  %v252_v4 = vld [vmem:[%s953_s13 + $0x188] sm:$0xff]  ;;  %v221_v11 = vld [vmem:[%s953_s13 + $0x90] sm:$0xff]  ;;  %s549_s11 = sshll.u32 %s870_s2, 6  ;;  %s195_s18 = scalar_lea.vmem [#allocation6], %s542_s10 }
  0x49   : > { %v203_v5 = vld [vmem:[%s953_s13] sm:$0xff]  ;;  %v204_v6 = vld [vmem:[%s953_s13 + $0x8] sm:$0xff]  ;;  %v650_v7 = vpack.c.bf16 %v252_v4, %v251_v2  ;;  %v222_v13 = vld [vmem:[%s953_s13 + $0x98] sm:$0xff]  ;;  %s460_s20 = sshll.u32 %s195_s18, 4  ;;  %s1037_s27 = scalar_lea.hbm %s1084_s3, %s549_s11  ;;  %s1039_s20 = int_to_ptr.vmem [resolvable:$true] %s460_s20 }
  0x4a   : > { %v620_v8 = vpack.c.bf16 %v204_v6, %v203_v5  ;;  %v235_v9 = vld [vmem:[%s953_s13 + $0x100] sm:$0xff]  ;;  %v236_v10 = vld [vmem:[%s953_s13 + $0x108] sm:$0xff]  ;;  %619 = vmatprep.subr.bf16.mxu0 %v618_v3  ;;  %v253_v14 = vld [vmem:[%s953_s13 + $0x190] sm:$0xff]  ;;  %v622_v16 = vpack.c.bf16 %v222_v13, %v221_v11  ;;  %s446_s28 = scalar_lea.sflag [#allocation5], %s949_s8  ;;  %s753_s29 = scalar_lea.vmem %s1039_s20, 64 }
  0x4b   : > { %v652_v12 = vpack.c.bf16 %v236_v10, %v235_v9  ;;  %v254_v15 = vld [vmem:[%s953_s13 + $0x198] sm:$0xff]  ;;  %651 = vmatprep.subr.bf16.mxu1 %v650_v7  ;;  %v205_v18 = vld [vmem:[%s953_s13 + $0x10] sm:$0xff]  ;;  %v223_v22 = vld [vmem:[%s953_s13 + $0xa0] sm:$0xff]  ;;  %p754_p6 = scmp.ne.s32.totalorder %s1039_s20, %s753_s29  ;;  %s825_s2 = smov [#allocation6]  }
  0x4c   : > { %621 = vmatpush3.bf16.xpose.msra.mxu0 %v620_v8  ;;  %v654_v17 = vpack.c.bf16 %v254_v15, %v253_v14  ;;  %v206_v19 = vld [vmem:[%s953_s13 + $0x18] sm:$0xff]  ;;  %v237_v20 = vld [vmem:[%s953_s13 + $0x110] sm:$0xff]  ;;  %v224_v23 = vld [vmem:[%s953_s13 + $0xa8] sm:$0xff]  ;;  %s757_s4 = sshll.u32 %s825_s2, 4  ;;  %s758_s4 = int_to_ptr.vmem [resolvable:$false] %s757_s4 }
  0x4d   : > { %653 = vmatpush3.bf16.xpose.msra.mxu1 %v652_v12  ;;  %623 = vmatprep.subr.bf16.mxu0 %v622_v16  ;;  %v238_v21 = vld [vmem:[%s953_s13 + $0x118] sm:$0xff]  ;;  %v255_v24 = vld [vmem:[%s953_s13 + $0x1a0] sm:$0xff]  ;;  %v256_v25 = vld [vmem:[%s953_s13 + $0x1a8] sm:$0xff]  ;;  %v624_v26 = vpack.c.bf16 %v206_v19, %v205_v18  ;;  %v626_v28 = vpack.c.bf16 %v224_v23, %v223_v22  ;;  %p755_p10 = pnand %p754_p6, %p893_p9  ;;  %s759_s6 = scalar_lea.vmem %s758_s4, 128 }
  0x4e   : > { %655 = vmatprep.subr.bf16.mxu1 %v654_v17  ;;  %v656_v27 = vpack.c.bf16 %v238_v21, %v237_v20  ;;  %v658_v29 = vpack.c.bf16 %v256_v25, %v255_v24  ;;  %v207_v30 = vld [vmem:[%s953_s13 + $0x20] sm:$0xff]  ;;  %v208_v31 = vld [vmem:[%s953_s13 + $0x28] sm:$0xff]  ;;  %v225_v34 = vld [vmem:[%s953_s13 + $0xb0] sm:$0xff]  ;;  %p760_p13 = scmp.lt.s32.totalorder %s1039_s20, %s758_s4  ;;  %p761_p12 = scmp.lt.s32.totalorder %s759_s6, %s753_s29 }
  0x4f   : > { %v239_v32 = vld [vmem:[%s953_s13 + $0x120] sm:$0xff]  ;;  %v240_v33 = vld [vmem:[%s953_s13 + $0x128] sm:$0xff]  ;;  %v226_v35 = vld [vmem:[%s953_s13 + $0xb8] sm:$0xff]  ;;  %v628_v38 = vpack.c.bf16 %v208_v31, %v207_v30  ;;  %p756_p11 = pneg %p755_p10 }
  0x50   : > { %v257_v36 = vld [vmem:[%s953_s13 + $0x1b0] sm:$0xff]  ;;  %v258_v37 = vld [vmem:[%s953_s13 + $0x1b8] sm:$0xff]  ;;  %v660_v39 = vpack.c.bf16 %v240_v33, %v239_v32  ;;  %v630_v40 = vpack.c.bf16 %v226_v35, %v225_v34  ;;  %v993_v45 = vld [vmem:[%s1082_s1] sm:$0x1]  ;;  %v824_v33 = vmov 1966171168   ;;  %v420_v35 = vlaneseq  ;;  %p762_p0 = por %p761_p12, %p760_p13 }
  0x51   : > { %v662_v41 = vpack.c.bf16 %v258_v37, %v257_v36  ;;  %v209_v42 = vld [vmem:[%s953_s13 + $0x30] sm:$0xff]  ;;  %v210_v43 = vld [vmem:[%s953_s13 + $0x38] sm:$0xff]  ;;  %v227_v47 = vld [vmem:[%s953_s13 + $0xc0] sm:$0xff]  ;;  %582 = vmatprep.mubr.f32.mxu0 %v993_v45  ;;  %616 = vmatprep.mubr.f32.mxu1 %v993_v45  ;;  %v418_v34 = vunpack.c.l.s4 %v824_v33  ;;  %v268_v36 = vstv %s267_s5 }
  0x52   : > { %v241_v44 = vld [vmem:[%s953_s13 + $0x130] sm:$0xff]  ;;  %v242_v46 = vld [vmem:[%s953_s13 + $0x138] sm:$0xff]  ;;  %v228_v48 = vld [vmem:[%s953_s13 + $0xc8] sm:$0xff]  ;;  %v632_v51 = vpack.c.bf16 %v210_v43, %v209_v42  ;;  %vm442_vm0 = vcmp.lt.s32.totalorder %v420_v35, 512  ;;  %p763_p1 = pnand %p762_p0, %p756_p11 }
  0x53   : > { %v259_v49 = vld [vmem:[%s953_s13 + $0x1c0] sm:$0xff]  ;;  %v260_v50 = vld [vmem:[%s953_s13 + $0x1c8] sm:$0xff]  ;;  %v664_v52 = vpack.c.bf16 %v242_v46, %v241_v44  ;;  %v634_v53 = vpack.c.bf16 %v228_v48, %v227_v47  ;;  %v229_v59 = vld [vmem:[%s953_s13 + $0xd0] sm:$0xff]  ;;  %v419_v37 = vunpack.c.0.s8 %v418_v34 }
  0x54   : > { %625 = vmatpush3.bf16.xpose.msra.mxu0 %v624_v26  ;;  %v666_v54 = vpack.c.bf16 %v260_v50, %v259_v49  ;;  %v211_v55 = vld [vmem:[%s953_s13 + $0x40] sm:$0xff]  ;;  %v212_v56 = vld [vmem:[%s953_s13 + $0x48] sm:$0xff]  ;;  %v230_v60 = vld [vmem:[%s953_s13 + $0xd8] sm:$0xff] }
  0x55   : > { %657 = vmatpush3.bf16.xpose.msra.mxu1 %v656_v27  ;;  %627 = vmatprep.subr.bf16.mxu0 %v626_v28  ;;  %v243_v57 = vld [vmem:[%s953_s13 + $0x140] sm:$0xff]  ;;  %v244_v58 = vld [vmem:[%s953_s13 + $0x148] sm:$0xff]  ;;  %v261_v61 = vld [vmem:[%s953_s13 + $0x1d0] sm:$0xff]  ;;  %v636_v63 = vpack.c.bf16 %v212_v56, %v211_v55  ;;  %v638_v1 = vpack.c.bf16 %v230_v60, %v229_v59 }
  0x56   : > { %659 = vmatprep.subr.bf16.mxu1 %v658_v29  ;;  %v262_v62 = vld [vmem:[%s953_s13 + $0x1d8] sm:$0xff]  ;;  %v668_v0 = vpack.c.bf16 %v244_v58, %v243_v57  ;;  %v213_v3 = vld [vmem:[%s953_s13 + $0x50] sm:$0xff]  ;;  %v231_v7 = vld [vmem:[%s953_s13 + $0xe0] sm:$0xff] }
  0x57   : > { %v670_v2 = vpack.c.bf16 %v262_v62, %v261_v61  ;;  %v214_v4 = vld [vmem:[%s953_s13 + $0x58] sm:$0xff]  ;;  %v245_v5 = vld [vmem:[%s953_s13 + $0x150] sm:$0xff]  ;;  %v232_v8 = vld [vmem:[%s953_s13 + $0xe8] sm:$0xff] }
  0x58   : > { %v246_v6 = vld [vmem:[%s953_s13 + $0x158] sm:$0xff]  ;;  %v263_v9 = vld [vmem:[%s953_s13 + $0x1e0] sm:$0xff]  ;;  %v264_v10 = vld [vmem:[%s953_s13 + $0x1e8] sm:$0xff]  ;;  %v640_v11 = vpack.c.bf16 %v214_v4, %v213_v3  ;;  %v642_v13 = vpack.c.bf16 %v232_v8, %v231_v7 }
  0x59   : > { %v672_v12 = vpack.c.bf16 %v246_v6, %v245_v5  ;;  %v674_v14 = vpack.c.bf16 %v264_v10, %v263_v9  ;;  %v215_v15 = vld [vmem:[%s953_s13 + $0x60] sm:$0xff]  ;;  %v216_v16 = vld [vmem:[%s953_s13 + $0x68] sm:$0xff]  ;;  %v233_v19 = vld [vmem:[%s953_s13 + $0xf0] sm:$0xff] }
  0x5a   : > { %v247_v17 = vld [vmem:[%s953_s13 + $0x160] sm:$0xff]  ;;  %v248_v18 = vld [vmem:[%s953_s13 + $0x168] sm:$0xff]  ;;  %v234_v20 = vld [vmem:[%s953_s13 + $0xf8] sm:$0xff]  ;;  %v644_v23 = vpack.c.bf16 %v216_v16, %v215_v15 }
  0x5b   : > { %v265_v21 = vld [vmem:[%s953_s13 + $0x1f0] sm:$0xff]  ;;  %v266_v22 = vld [vmem:[%s953_s13 + $0x1f8] sm:$0xff]  ;;  %v676_v24 = vpack.c.bf16 %v248_v18, %v247_v17  ;;  %v646_v25 = vpack.c.bf16 %v234_v20, %v233_v19 }
  0x5c   : > { %629 = vmatpush3.bf16.xpose.msra.mxu0 %v628_v38  ;;  %v678_v26 = vpack.c.bf16 %v266_v22, %v265_v21  ;;  %v217_v27 = vld [vmem:[%s953_s13 + $0x70] sm:$0xff]  ;;  %v218_v28 = vld [vmem:[%s953_s13 + $0x78] sm:$0xff]  ;;  %v421_v38 = vshrl.u32 %v420_v35, 7 }
  0x5d   : > { %661 = vmatpush3.bf16.xpose.msra.mxu1 %v660_v39  ;;  %631 = vmatprep.subr.bf16.mxu0 %v630_v40  ;;  %v249_v29 = vld [vmem:[%s953_s13 + $0x170] sm:$0xff]  ;;  %v250_v30 = vld [vmem:[%s953_s13 + $0x178] sm:$0xff]  ;;  %v648_v31 = vpack.c.bf16 %v218_v28, %v217_v27 }
  0x5e   : > { %663 = vmatprep.subr.bf16.mxu1 %v662_v41  ;;  %v680_v32 = vpack.c.bf16 %v250_v30, %v249_v29  ;;  %v422_v46 = vsub.s32 %v419_v37, %v421_v38 }
  0x64   : > { %633 = vmatpush3.bf16.xpose.msra.mxu0 %v632_v51 }
  0x65   : > { %665 = vmatpush3.bf16.xpose.msra.mxu1 %v664_v52  ;;  %635 = vmatprep.subr.bf16.mxu0 %v634_v53 }
  0x66   : > { %667 = vmatprep.subr.bf16.mxu1 %v666_v54 }
  0x6c   : > { %637 = vmatpush3.bf16.xpose.msra.mxu0 %v636_v63 }
  0x6d   : > { %669 = vmatpush3.bf16.xpose.msra.mxu1 %v668_v0  ;;  %639 = vmatprep.subr.bf16.mxu0 %v638_v1 }
  0x6e   : > { %671 = vmatprep.subr.bf16.mxu1 %v670_v2 }
  0x74   : > { %641 = vmatpush3.bf16.xpose.msra.mxu0 %v640_v11 }
  0x75   : > { %673 = vmatpush3.bf16.xpose.msra.mxu1 %v672_v12  ;;  %643 = vmatprep.subr.bf16.mxu0 %v642_v13 }
  0x76   : > { %675 = vmatprep.subr.bf16.mxu1 %v674_v14 }
  0x7c   : > { %645 = vmatpush3.bf16.xpose.msra.mxu0 %v644_v23 }
  0x7d   : > { %677 = vmatpush3.bf16.xpose.msra.mxu1 %v676_v24  ;;  %647 = vmatprep.subr.bf16.mxu0 %v646_v25 }
  0x7e   : > { %679 = vmatprep.subr.bf16.mxu1 %v678_v26 }
  0x84   : > { %649 = vmatpush3.bf16.xpose.msra.mxu0 %v648_v31 }
  0x85   : > { %681 = vmatpush3.bf16.xpose.msra.mxu1 %v680_v32 }
  0x8b   : > { %583 = vmatmul.mubr.f32.vlgmr.msra.gmra.mrb[0].mxu0 %v993_v45 }
  0x8c   : > { %617 = vmatmul.mubr.f32.vlgmr.msra.gmra.mrb[0].mxu1 %v993_v45 }
 0x15e   : > { %v335_v39 = vpop.f32.mrb[0].mxu0 }
 0x15f   : > { %v336_v40 = vadd.f32 %v335_v39, %v268_v36  ;;  %v406_v41 = vpop.f32.mrb[0].mxu1  ;;  %v337_v42 = vpop.f32.mrb[1].mxu0 }
 0x160   : > { %v407_v43 = vadd.f32 %v406_v41, %v268_v36  ;;  %v338_v44 = vadd.f32 %v337_v42, %v268_v36  ;;  %v408_v47 = vpop.f32.mrb[1].mxu1 }
 0x161   : > { %v409_v45 = vadd.f32 %v408_v47, %v268_v36 }
 0x162   : > { %v415_v48 = vcombine.low %v336_v40, %v338_v44 }
 0x163   : > { %v416_v49 = vcombine.low %v407_v43, %v409_v45 }
 0x164   : > { %v423_v50 = vrot.slane %v415_v48, %v422_v46 }
 0x165   : > { %v430_v51 = vrot.slane %v416_v49, %v422_v46 }
 0x167   : > { %v431_v52 = vcombine.low %v423_v50, %v430_v51 }
 0x169   : > { %v438_v53 = vrot.slane %v431_v52, %v422_v46 }
 0x16b   : > { %444 = vst.msk [vmem:[%s195_s18] sm:$0xf] %vm442_vm0, %v438_v53 }
 0x16c   : > { %766 = shalt.err (!%p763_p1)
}
 0x16d   : > { %s767_s7 = scalar_lea.hbm %s1037_s27, 64  ;;  %s771_s12 = scalar_lea.hbm %s1084_s3, 128 }
 0x16e   : > { %p768_p3 = scmp.ne.s32.totalorder %s1037_s27, %s767_s7  ;;  %p772_p2 = scmp.lt.u32.totalorder %s1037_s27, %s1084_s3 }
 0x16f   : > { %p773_p7 = scmp.lt.u32.totalorder %s771_s12, %s767_s7  ;;  %p775_p6 = scmp.lt.u32.totalorder %s767_s7, %s1037_s27 }
 0x170   : > { %p769_p4 = pnand %p768_p3, %p893_p9 }
 0x171   : > { %p774_p8 = por %p773_p7, %p772_p2 }
 0x172   : > { %p770_p5 = pneg %p769_p4 }
 0x173   : > { %p776_p10 = por %p775_p6, %p774_p8 }
 0x175   : > { %p777_p11 = pnand %p776_p10, %p770_p5 }
 0x177   : > { %780 = shalt.err (!%p777_p11)
}
 0x178   : > { %683 = dma.vmem_to_hbm [thread:$0]  (%p893_p9), %s1039_s20, 64, %s1037_s27, %s446_s28  }
 0x179 PF: > { %s472_s30 = sand.u32 1, %s807_s14   ;;  %p1089_p13 = scmp.ne.s32.totalorder %s1088_s25, 0 }
 0x17a   : > { %p1090_p12 = scmp.ge.s32.totalorder %s819_s17, 2  ;;  %s473_s5 = scalar_lea.sflag [#allocation5], %s472_s30 }
 0x17c   : > { %p686_p0 = pnand %p1090_p12, %p1089_p13 }
 0x17e   : > { %802 = dma.done.wait (!%p686_p0), %s473_s5, 64  }
 0x17f   : > { %804 = vsyncadd (!%p686_p0), %s473_s5, 4294967232  ;;  %p17_p1 = scmp.ge.s32.totalorder %s874_s19, 4   ;;  %s1091_s14 = smov %s811_s15 }
 0x180   : > { %s1092_s15 = smov %s815_s16  ;;  %s1093_s16 = smov %s886_s22 }
 0x181   : > { %s1094_s17 = smov %s874_s19  ;;  %19 = sbr.rel (!%p17_p1) target bundleno = 7 (0x7), region = 77 }
 0x188   :  { %478 = vsyncpa [#allocation4], 1 }
 0x189   :  { %480 = vsyncpa [#allocation4 + $0x1], 1 }
 0x18a   :  { %481 = vsyncpa [#allocation5], 1 }
 0x18b   :  { %483 = vsyncpa [#allocation5 + $0x1], 1 }

</bundles_post_ra>
